<compile_context>
chip_gen: v6e
topology: v6e:2x2x1
jax: 0.10.0
libtpu: 0.0.40
codegen_flags: <defaults>
</compile_context>

<pallas_src>
import jax
import jax.numpy as jnp
from jax.experimental import pallas as pl
from jax.experimental.pallas import tpu as pltpu

_MIB = 1024 * 1024


def _round_up(x, m):
    return ((x + m - 1) // m) * m


def _padded_tile_bytes(rows, cols, itemsize):
    """VMEM footprint of a (rows, cols) tile after (8, 128) layout padding."""
    return _round_up(max(rows, 1), 8) * _round_up(max(cols, 1), 128) * itemsize


def _vmem_limit_bytes():
    """Generation-aware scoped-VMEM limit (conservative fallback = v7x)."""
    try:
        cap = int(pltpu.get_tpu_info().vmem_capacity_bytes)
    except Exception:
        cap = 64 * _MIB  # v7x physical VMEM: smallest current part
    if cap <= 64 * _MIB:
        return 32 * _MIB                    # v7x: stay well under 64 MiB
    return min(96 * _MIB, (cap * 3) // 4)   # v5e / v6e: 128 MiB physical


def _choose_row_tile(n_rows, bytes_per_row, h_buffer_budget, *,
                     min_bw_bytes=1 * _MIB, target_tiles=8):
    """Row tile sized by lane-padded bytes (multiple of 8, or the full rows).

    bytes_per_row includes BOTH the h tile and the score tile (lane padded).
    """
    by_bytes = max(8, (h_buffer_budget // bytes_per_row) // 8 * 8)
    # Prefer >= target_tiles grid steps (v7x two-TC sharding + pipelining
    # overlap), but never shrink a tile below ~min_bw_bytes of payload.
    by_parallel = max(8, _round_up(pl.cdiv(n_rows, target_tiles), 8))
    min_bw_rows = max(8, _round_up(pl.cdiv(min_bw_bytes, bytes_per_row), 8))
    tile = min(by_bytes, max(by_parallel, min_bw_rows))
    # Never exceed the array: a block equal to the full dim is always legal.
    return int(max(1, min(tile, n_rows)))


def _make_kernel(packed):
    if packed:
        def kernel(h_ref, vt_ref, b_ref, wsel_ref, o_ref):
            # (TMp, k*F) @ (k*F, k*H) on the MXU, f32 accumulation.
            z = jnp.dot(h_ref[...], vt_ref[...],
                        preferred_element_type=jnp.float32) + b_ref[...]
            t = jnp.tanh(z)                                    # EUP
            # Segmented per-instance w-reduce as a narrow MXU matmul:
            # W_sel[j*H+i, j] = w[i]  ->  (TMp, k) scores, k lanes dense.
            o_ref[...] = jnp.dot(
                t, wsel_ref[...],
                preferred_element_type=jnp.float32).astype(o_ref.dtype)
    else:
        def kernel(h_ref, vt_ref, b_ref, w_ref, o_ref):
            z = jnp.dot(h_ref[...], vt_ref[...],
                        preferred_element_type=jnp.float32) + b_ref[...]
            t = jnp.tanh(z)                                    # EUP
            # w^T t as a VPU multiply + lane reduce (no 1-column MXU matvec).
            o_ref[...] = jnp.sum(t * w_ref[...], axis=-1,
                                 keepdims=True).astype(o_ref.dtype)
    return kernel


def mil_attention(h, V_weight, V_bias, w_weight):
    """h: (B, K, F). Returns (B, K) un-normalized attention logits,
    matching MILAttention.forward (w^T tanh(V h + b), squeezed)."""
    B, K, F = h.shape
    H = V_weight.shape[0]
    N = B * K
    dtype = h.dtype
    itemsize = jnp.dtype(dtype).itemsize

    # ---- lane-packing factor: pack k rows per 128-lane group when F, H small.
    k = 1
    if F <= 64 and 128 % F == 0 and H <= 128:
        k = 128 // F
        while k > 1 and N % k != 0:   # keep the (N, F)->(N/k, k*F) view exact
            k //= 2
    packed = k > 1

    n_rows = N // k            # packed rows
    Fp, Hp = k * F, k * H      # packed feature / hidden widths

    # Contiguous row-major reshape: no data movement under jit.
    h_rows = h.reshape(n_rows, Fp)

    if packed:
        eye = jnp.eye(k, dtype=dtype)
        # Block-diagonal V^T (k*F, k*H): block (j, j) = V^T, off-diagonal = 0.
        vt = jnp.einsum("ab,fh->afbh", eye, V_weight.T).reshape(Fp, Hp)
        b = jnp.tile(V_bias, k).reshape(1, Hp)
        # Segmented-reduce matrix: W_sel[j*H + i, j] = w[i].
        w_red = jnp.einsum("ab,h->ahb", eye,
                           w_weight.reshape(-1)).reshape(Hp, k)
    else:
        vt = V_weight.T                    # (F, H)
        b = V_bias.reshape(1, H)           # (1, H)
        w_red = w_weight.reshape(1, H)     # row layout for the VPU reduce

    # ---- tile sizing by lane-padded BYTES (feedback items 1, 2, 6, 7).
    vmem_limit = _vmem_limit_bytes()
    weight_bytes = 2 * (_padded_tile_bytes(*vt.shape, itemsize)
                        + _padded_tile_bytes(*b.shape, itemsize)
                        + _padded_tile_bytes(*w_red.shape, itemsize))
    # Per-row VMEM cost of the pipelined tiles: h row + score row, lane padded.
    bytes_per_row = (_round_up(Fp, 128) + _round_up(k, 128)) * itemsize
    per_buffer_budget = min(4 * _MIB,
                            max(512 * 1024,
                                (vmem_limit - weight_bytes - 2 * _MIB) // 2))
    row_tile = _choose_row_tile(n_rows, bytes_per_row, per_buffer_budget)
    num_tiles = int(pl.cdiv(n_rows, row_tile))

    cost = pl.CostEstimate(
        flops=int(2 * n_rows * Fp * Hp + 2 * n_rows * Hp * k),
        transcendentals=int(n_rows * Hp),
        bytes_accessed=int((n_rows * Fp + Fp * Hp + Hp + Hp * k
                            + n_rows * k) * itemsize),
    )

    out = pl.pallas_call(
        _make_kernel(packed),
        out_shape=jax.ShapeDtypeStruct((n_rows, k), dtype),
        grid_spec=pltpu.PrefetchScalarGridSpec(
            num_scalar_prefetch=0,
            grid=(num_tiles,),
            in_specs=[
                # h rows: pipelined over the grid (double-buffered by Pallas).
                # Next knob if DMA is still exposed in profiles:
                # pipeline_mode=pl.Buffered(3)  (already inside the budget).
                pl.BlockSpec((row_tile, Fp), lambda i: (i, 0)),
                pl.BlockSpec(vt.shape, lambda i: (0, 0)),      # V^T  (resident)
                pl.BlockSpec(b.shape, lambda i: (0, 0)),       # bias (resident)
                pl.BlockSpec(w_red.shape, lambda i: (0, 0)),   # w / W_sel
            ],
            out_specs=pl.BlockSpec((row_tile, k), lambda i: (i, 0)),
        ),
        compiler_params=pltpu.CompilerParams(
            # Independent row tiles -> megacore / v7x 2-TC sharding.
            dimension_semantics=("parallel",),
            vmem_limit_bytes=int(vmem_limit),
        ),
        cost_estimate=cost,
    )(h_rows, vt, b, w_red)

    # (n_rows, k) flattened row-major is exactly the original instance order;
    # no host-side padding was added, so no tail slice is needed.
    return out.reshape(B, K)


def mil_attention_ref(h, V_weight, V_bias, w_weight):
    """Pure-JAX reference matching the PyTorch semantics exactly."""
    z = jnp.einsum("bkf,hf->bkh", h, V_weight) + V_bias
    return jnp.einsum("bkh,h->bk", jnp.tanh(z), w_weight.reshape(-1))


if __name__ == "__main__":
    # Small shapes consistent with the module: batch=2, bag of K=8 instances,
    # feature_dim=32, hidden_dim=32.
    B, K, F, H = 2, 8, 32, 32

    key = jax.random.PRNGKey(0)
    k_h, k_vw, k_vb, k_w = jax.random.split(key, 4)

    # PyTorch-Linear-style uniform init bounds, deterministic.
    bound_v = 1.0 / (F ** 0.5)
    bound_w = 1.0 / (H ** 0.5)
    V_weight = jax.random.uniform(k_vw, (H, F), jnp.float32, -bound_v, bound_v)
    V_bias = jax.random.uniform(k_vb, (H,), jnp.float32, -bound_v, bound_v)
    w_weight = jax.random.uniform(k_w, (1, H), jnp.float32, -bound_w, bound_w)

    h = jax.random.normal(k_h, (B, K, F), jnp.float32)

    fwd = jax.jit(mil_attention)
    out = jax.block_until_ready(fwd(h, V_weight, V_bias, w_weight))
    ref = mil_attention_ref(h, V_weight, V_bias, w_weight)

    assert out.shape == (B, K)
    assert jnp.allclose(out, ref, atol=2e-5, rtol=2e-5), (
        f"mismatch: max abs err {jnp.max(jnp.abs(out - ref))}"
    )

    print("KERNEL_OK")
</pallas_src>

<mosaic_0001>
module attributes {stable_mosaic.version = 11 : i64} {
  func.func @kernel(%arg0: i32, %arg1: memref<4x128xf32, #tpu.memory_space<vmem>>, %arg2: memref<128x128xf32, #tpu.memory_space<vmem>>, %arg3: memref<1x128xf32, #tpu.memory_space<vmem>>, %arg4: memref<128x4xf32, #tpu.memory_space<vmem>>, %arg5: memref<4x4xf32, #tpu.memory_space<vmem>>) attributes {dimension_semantics = [#tpu.dimension_semantics<parallel>], iteration_bounds = array<i64: 1>, scalar_prefetch = 0 : i64, scratch_operands = 0 : i64, tpu.core_type = #tpu.core_type<tc>, window_params = [{transform_indices = @transform_0, window_bounds = array<i64: 4, 128>}, {pipeline_mode = #tpu.pipeline_mode<synchronous>, transform_indices = @transform_1, window_bounds = array<i64: 128, 128>}, {pipeline_mode = #tpu.pipeline_mode<synchronous>, transform_indices = @transform_2, window_bounds = array<i64: 1, 128>}, {pipeline_mode = #tpu.pipeline_mode<synchronous>, transform_indices = @transform_3, window_bounds = array<i64: 128, 4>}, {transform_indices = @transform_4, window_bounds = array<i64: 4, 4>}]} {
    %c0 = arith.constant 0 : index
    %c0_0 = arith.constant 0 : index
    %0 = vector.load %arg1[%c0, %c0_0] : memref<4x128xf32, #tpu.memory_space<vmem>>, vector<4x128xf32>
    %c0_1 = arith.constant 0 : index
    %c0_2 = arith.constant 0 : index
    %1 = vector.load %arg2[%c0_1, %c0_2] : memref<128x128xf32, #tpu.memory_space<vmem>>, vector<128x128xf32>
    %cst = arith.constant dense<0.000000e+00> : vector<4x128xf32>
    %2 = tpu.matmul %0, %1, %cst {dimension_numbers = #tpu.dot_dimension_numbers<[1], [0], [0], [1], [0, 0, 1, 1], [], []>} : vector<4x128xf32>, vector<128x128xf32>, vector<4x128xf32> -> vector<4x128xf32>
    %c0_3 = arith.constant 0 : index
    %c0_4 = arith.constant 0 : index
    %3 = vector.load %arg3[%c0_3, %c0_4] : memref<1x128xf32, #tpu.memory_space<vmem>>, vector<1x128xf32>
    %4 = vector.broadcast %3 : vector<1x128xf32> to vector<4x128xf32>
    %5 = arith.addf %2, %4 : vector<4x128xf32>
    %6 = math.tanh %5 : vector<4x128xf32>
    %c0_5 = arith.constant 0 : index
    %c0_6 = arith.constant 0 : index
    %7 = vector.load %arg4[%c0_5, %c0_6] : memref<128x4xf32, #tpu.memory_space<vmem>>, vector<128x4xf32>
    %cst_7 = arith.constant dense<0.000000e+00> : vector<4x4xf32>
    %8 = tpu.matmul %6, %7, %cst_7 {dimension_numbers = #tpu.dot_dimension_numbers<[1], [0], [0], [1], [0, 0, 1, 1], [], []>} : vector<4x128xf32>, vector<128x4xf32>, vector<4x4xf32> -> vector<4x4xf32>
    %c0_8 = arith.constant 0 : index
    %c0_9 = arith.constant 0 : index
    %9 = vector.load %arg5[%c0_8, %c0_9] : memref<4x4xf32, #tpu.memory_space<vmem>>, vector<4x4xf32>
    tpu.vector_store %arg5[%c0_8, %c0_9], %8 {strides = array<i32>} : memref<4x4xf32, #tpu.memory_space<vmem>>, vector<4x4xf32>,
    return
  }
  func.func @transform_0(%arg0: i32) -> (i32, i32) {
    %c0_i32 = arith.constant 0 : i32
    %c0_i32_0 = arith.constant 0 : i32
    return %arg0, %c0_i32 : i32, i32
  }
  func.func @transform_1(%arg0: i32) -> (i32, i32) {
    %c0_i32 = arith.constant 0 : i32
    %c0_i32_0 = arith.constant 0 : i32
    %c0_i32_1 = arith.constant 0 : i32
    return %c0_i32, %c0_i32_0 : i32, i32
  }
  func.func @transform_2(%arg0: i32) -> (i32, i32) {
    %c0_i32 = arith.constant 0 : i32
    %c0_i32_0 = arith.constant 0 : i32
    %c0_i32_1 = arith.constant 0 : i32
    return %c0_i32, %c0_i32_0 : i32, i32
  }
  func.func @transform_3(%arg0: i32) -> (i32, i32) {
    %c0_i32 = arith.constant 0 : i32
    %c0_i32_0 = arith.constant 0 : i32
    %c0_i32_1 = arith.constant 0 : i32
    return %c0_i32, %c0_i32_0 : i32, i32
  }
  func.func @transform_4(%arg0: i32) -> (i32, i32) {
    %c0_i32 = arith.constant 0 : i32
    %c0_i32_0 = arith.constant 0 : i32
    return %arg0, %c0_i32 : i32, i32
  }
}

</mosaic_0001>

<bundles_post_ra>
// kernel: tile.8
= control target key start
LH: loop header
LB: loop body
LE: loop exit
PB: predicated region body
PF: predicated region fallthrough
CT: control target
= control target key end

     0   :  { %s22_s0 = inlined_call_operand.vmem [shape: f32[32], index: 0, kind: input, shape index: {}]   ;;  %s23_s1 = inlined_call_operand.vmem [shape: f32[4,32], index: 1, kind: output, shape index: {}]  }
   0x1   :  { %v4_v0 = vld [vmem:[%s22_s0] ss:$0 sm:$0xff] }
   0x2   :  { %5 = vst [vmem:[%s23_s1] sm:$0xf] %v4_v0 }

// kernel: tile.9
= control target key start
LH: loop header
LB: loop body
LE: loop exit
PB: predicated region body
PF: predicated region fallthrough
CT: control target
= control target key end

     0   :  { %vm8_vm0 = vcmask 261120   ;;  %s40_s8 = smov 32   ;;  %s41_s9 = smov 64   ;;  %vm14_vm1 = vcmask 1048320   ;;  %vm20_vm2 = vcmask 785920   ;;  %vm26_vm3 = vcmask 523520   ;;  %s58_s0 = inlined_call_operand.vmem [shape: f32[4,32], index: 0, kind: input, shape index: {}]   ;;  %s59_s1 = inlined_call_operand.vmem [shape: f32[1,128], index: 1, kind: output, shape index: {}]  }
   0x1   :  { %v5_v0 = vld [vmem:[%s58_s0] sm:$0xf]  ;;  %s39_s0 = smov 96  }
   0x2   :  { %6 = vst [vmem:[#allocation1] sm:$0xf] %v5_v0 }
   0x9   :  { %v11_v1 = vld [vmem:[#allocation1 + $0x3] sm:$0x1]   ;;  %v23_v2 = vld [vmem:[#allocation1 + $0x1] sm:$0x1]   ;;  %v7_v3 = vld [vmem:[#allocation1] sm:$0x1]  }
   0xa   :  { %12 = vrot.lane.b32.xlu0 %v11_v1, %s39_s0  ;;  %24 = vrot.lane.b32.xlu1 %v23_v2, %s40_s8  ;;  %v17_v4 = vld [vmem:[#allocation1 + $0x2] sm:$0x1]   ;;  %9 = vst.msk [vmem:[#allocation0] sm:$0x1] %vm8_vm0, %v7_v3  }
   0xe   :  { %18 = vrot.lane.b32.xlu0 %v17_v4, %s41_s9 }
  0x7c   :  { %v13_v5 = vpop.permute.xlu0 %12   ;;  %v25_v6 = vpop.permute.xlu1 %24  }
  0x7d   :  { %15 = vst.msk [vmem:[#allocation0] sm:$0x1] %vm14_vm1, %v13_v5  }
  0x80   :  { %v19_v7 = vpop.permute.xlu0 %18  }
  0x81   :  { %21 = vst.msk [vmem:[#allocation0] sm:$0x1] %vm20_vm2, %v19_v7  }
  0x82   :  { %27 = vst.msk [vmem:[#allocation0] sm:$0x1] %vm26_vm3, %v25_v6  }
  0x89   :  { %v32_v8 = vld [vmem:[#allocation0] sm:$0x1] }
  0x8a   :  { %35 = vst [vmem:[%s59_s1] sm:$0x1] %v32_v8 }

// kernel: mil_attention.1
= control target key start
LH: loop header
LB: loop body
LE: loop exit
PB: predicated region body
PF: predicated region fallthrough
CT: control target
= control target key end

     0   :  { %v313_v0 = vmov 0.0   ;;  %vm314_vm0 = vmmov 0   ;;  %vm198_vm1 = vcmask 27648   ;;  %s479_s1 = inlined_call_operand.vmem [shape: f32[128,128], index: 1, kind: input, shape index: {}]   ;;  %s480_s3 = inlined_call_operand.vmem [shape: f32[128,4], index: 3, kind: input, shape index: {}]   ;;  %s481_s0 = inlined_call_operand.vmem [shape: f32[4,128], index: 0, kind: input, shape index: {}]   ;;  %s482_s2 = inlined_call_operand.vmem [shape: f32[1,128], index: 2, kind: input, shape index: {}]   ;;  %s483_s4 = inlined_call_operand.vmem [shape: f32[4,4], index: 4, kind: output, shape index: {}]  }
   0x1   :  { %239 = vmatprep.subr.mxu0 %v313_v0  ;;  %v33_v1 = vld [vmem:[%s479_s1 + $0x78] sm:$0xff]  ;;  %v32_v2 = vld [vmem:[%s479_s1 + $0x70] sm:$0xff]  ;;  %271 = vmatprep.mubr.msk.f32.mxu0 %vm314_vm0, %v313_v0  ;;  %v31_v3 = vld [vmem:[%s479_s1 + $0x68] sm:$0xff] }
   0x2   :  { %240 = vmatpush3.msra.mxu0 %v33_v1  ;;  %274 = vmatprep.subr.mxu1 %v313_v0  ;;  %v30_v4 = vld [vmem:[%s479_s1 + $0x60] sm:$0xff]  ;;  %v127_v5 = vld [vmem:[%s480_s3 + $0x78] sm:$0xff]  ;;  %v126_v7 = vld [vmem:[%s480_s3 + $0x70] sm:$0xff] }
   0x3   :  { %241 = vmatprep.subr.mxu0 %v313_v0  ;;  %306 = vmatprep.mubr.msk.f32.mxu1 %vm314_vm0, %v313_v0  ;;  %v29_v6 = vld [vmem:[%s479_s1 + $0x58] sm:$0xff]  ;;  %v125_v8 = vld [vmem:[%s480_s3 + $0x68] sm:$0xff]  ;;  %v28_v9 = vld [vmem:[%s479_s1 + $0x50] sm:$0xff] }
   0x4   :  { %242 = vmatpush3.msra.mxu0 %v32_v2  ;;  %275 = vmatpush3.msra.mxu1 %v127_v5  ;;  %v124_v10 = vld [vmem:[%s480_s3 + $0x60] sm:$0xff]  ;;  %v27_v11 = vld [vmem:[%s479_s1 + $0x48] sm:$0xff]  ;;  %v123_v12 = vld [vmem:[%s480_s3 + $0x58] sm:$0xff] }
   0x5   :  { %243 = vmatprep.subr.mxu0 %v313_v0  ;;  %276 = vmatprep.subr.mxu1 %v313_v0  ;;  %v26_v13 = vld [vmem:[%s479_s1 + $0x40] sm:$0xff]  ;;  %v122_v14 = vld [vmem:[%s480_s3 + $0x50] sm:$0xff]  ;;  %v25_v15 = vld [vmem:[%s479_s1 + $0x38] sm:$0xff] }
   0x6   :  { %244 = vmatpush3.msra.mxu0 %v31_v3  ;;  %277 = vmatpush3.msra.mxu1 %v126_v7  ;;  %v121_v16 = vld [vmem:[%s480_s3 + $0x48] sm:$0xff]  ;;  %v24_v17 = vld [vmem:[%s479_s1 + $0x30] sm:$0xff]  ;;  %v22_v19 = vld [vmem:[%s479_s1 + $0x20] sm:$0xff] }
   0x7   :  { %245 = vmatprep.subr.mxu0 %v313_v0  ;;  %278 = vmatprep.subr.mxu1 %v313_v0  ;;  %v23_v18 = vld [vmem:[%s479_s1 + $0x28] sm:$0xff]  ;;  %v21_v20 = vld [vmem:[%s479_s1 + $0x18] sm:$0xff]  ;;  %v20_v21 = vld [vmem:[%s479_s1 + $0x10] sm:$0xff] }
   0x8   :  { %246 = vmatpush3.msra.mxu0 %v30_v4  ;;  %279 = vmatpush3.msra.mxu1 %v125_v8  ;;  %v19_v22 = vld [vmem:[%s479_s1 + $0x8] sm:$0xff]  ;;  %v18_v23 = vld [vmem:[%s479_s1] sm:$0xff]  ;;  %v119_v26 = vld [vmem:[%s480_s3 + $0x38] sm:$0xff] }
   0x9   :  { %247 = vmatprep.subr.mxu0 %v313_v0  ;;  %280 = vmatprep.subr.mxu1 %v313_v0  ;;  %v17_v24 = vld [vmem:[%s481_s0] sm:$0xf]  ;;  %v118_v27 = vld [vmem:[%s480_s3 + $0x30] sm:$0xff]  ;;  %v117_v28 = vld [vmem:[%s480_s3 + $0x28] sm:$0xff] }
   0xa   :  { %248 = vmatpush3.msra.mxu0 %v29_v6  ;;  %281 = vmatpush3.msra.mxu1 %v124_v10  ;;  %v120_v25 = vld [vmem:[%s480_s3 + $0x40] sm:$0xff]  ;;  %v115_v30 = vld [vmem:[%s480_s3 + $0x18] sm:$0xff]  ;;  %v114_v31 = vld [vmem:[%s480_s3 + $0x10] sm:$0xff] }
   0xb   :  { %249 = vmatprep.subr.mxu0 %v313_v0  ;;  %282 = vmatprep.subr.mxu1 %v313_v0  ;;  %v116_v29 = vld [vmem:[%s480_s3 + $0x20] sm:$0xff]  ;;  %v113_v32 = vld [vmem:[%s480_s3 + $0x8] sm:$0xff] }
   0xc   :  { %250 = vmatpush3.msra.mxu0 %v28_v9  ;;  %283 = vmatpush3.msra.mxu1 %v123_v12  ;;  %v112_v33 = vld [vmem:[%s480_s3] sm:$0xff] }
   0xd   :  { %251 = vmatprep.subr.mxu0 %v313_v0  ;;  %284 = vmatprep.subr.mxu1 %v313_v0  ;;  %v204_v34 = vld [vmem:[%s482_s2] ss:$0 sm:$0xff] }
   0xe   :  { %252 = vmatpush3.msra.mxu0 %v27_v11  ;;  %285 = vmatpush3.msra.mxu1 %v122_v14 }
   0xf   :  { %253 = vmatprep.subr.mxu0 %v313_v0  ;;  %286 = vmatprep.subr.mxu1 %v313_v0 }
  0x10   :  { %254 = vmatpush3.msra.mxu0 %v26_v13  ;;  %287 = vmatpush3.msra.mxu1 %v121_v16 }
  0x11   :  { %255 = vmatprep.subr.mxu0 %v313_v0  ;;  %288 = vmatprep.subr.mxu1 %v313_v0 }
  0x12   :  { %256 = vmatpush3.msra.mxu0 %v25_v15  ;;  %289 = vmatpush3.msra.mxu1 %v120_v25 }
  0x13   :  { %257 = vmatprep.subr.mxu0 %v313_v0  ;;  %290 = vmatprep.subr.mxu1 %v313_v0 }
  0x14   :  { %258 = vmatpush3.msra.mxu0 %v24_v17  ;;  %291 = vmatpush3.msra.mxu1 %v119_v26 }
  0x15   :  { %259 = vmatprep.subr.mxu0 %v313_v0  ;;  %292 = vmatprep.subr.mxu1 %v313_v0 }
  0x16   :  { %260 = vmatpush3.msra.mxu0 %v23_v18  ;;  %293 = vmatpush3.msra.mxu1 %v118_v27 }
  0x17   :  { %261 = vmatprep.subr.mxu0 %v313_v0  ;;  %294 = vmatprep.subr.mxu1 %v313_v0 }
  0x18   :  { %262 = vmatpush3.msra.mxu0 %v22_v19  ;;  %295 = vmatpush3.msra.mxu1 %v117_v28 }
  0x19   :  { %263 = vmatprep.subr.mxu0 %v313_v0  ;;  %296 = vmatprep.subr.mxu1 %v313_v0 }
  0x1a   :  { %264 = vmatpush3.msra.mxu0 %v21_v20  ;;  %297 = vmatpush3.msra.mxu1 %v116_v29 }
  0x1b   :  { %265 = vmatprep.subr.mxu0 %v313_v0  ;;  %298 = vmatprep.subr.mxu1 %v313_v0 }
  0x1c   :  { %266 = vmatpush3.msra.mxu0 %v20_v21  ;;  %299 = vmatpush3.msra.mxu1 %v115_v30 }
  0x1d   :  { %267 = vmatprep.subr.mxu0 %v313_v0  ;;  %300 = vmatprep.subr.mxu1 %v313_v0 }
  0x1e   :  { %268 = vmatpush3.msra.mxu0 %v19_v22  ;;  %301 = vmatpush3.msra.mxu1 %v114_v31 }
  0x1f   :  { %269 = vmatprep.subr.mxu0 %v313_v0  ;;  %302 = vmatprep.subr.mxu1 %v313_v0 }
  0x20   :  { %270 = vmatpush3.msra.mxu0 %v18_v23  ;;  %303 = vmatpush3.msra.mxu1 %v113_v32 }
  0x21   :  { %272 = vmatmul.mubr.f32.vlgmr.msra.gmra.mxu0 %v17_v24  ;;  %304 = vmatprep.subr.mxu1 %v313_v0 }
  0x22   :  { %305 = vmatpush3.msra.mxu1 %v112_v33 }
  0xe1   :  { %v107_v35 = vpop.f32.mrf.mxu0 }
  0xe2   :  { %v108_v36 = vadd.f32 %v204_v34, %v107_v35 }
  0xe3   :  { %v273_v37 = vpop.f32.mrf.mxu0 }
  0xe4   :  { %311 = vtanh.f32 %v108_v36 }
  0xf1   :  { %v312_v38 = vpop.eup %311 }
  0xf2   :  { %307 = vmatmul.mubr.f32.vlgmr.msra.gmra.mxu1 %v312_v38 }
 0x1b2   :  { %v194_v39 = vpop.f32.mrf.mxu1 }
 0x1b3   :  { %199 = vst.msk [vmem:[%s483_s4] sm:$0xf] %vm198_vm1, %v194_v39 }
 0x1b4   :  { %v308_v40 = vpop.f32.mrf.mxu1 }

</bundles_post_ra>
